<compile_context>
chip_gen: v7x
topology: tpu7x:2x2x1
jax: 0.10.0
libtpu: 0.0.40
codegen_flags: <defaults>
</compile_context>

<pallas_src>
import functools

import jax
import jax.numpy as jnp
from jax.experimental import pallas as pl
from jax.experimental.pallas import tpu as pltpu

_EPS = 1e-5
_FUSED_MAX_ELEMS = 64 * 1024      # N*H*W threshold for the single fused kernel
_FUSED_MAX_BATCH = 32             # bound on the unrolled batch loop
_TILE_HW = 16 * 1024              # lane (spatial) tile for the two-pass path
_VMEM_LIMIT = 48 * 1024 * 1024    # <= v7x 64 MiB physical VMEM


# ----------------------------------------------------------------------------
# Pallas kernels
# ----------------------------------------------------------------------------
def _fused_conv_bn_relu_kernel(x_ref, w_ref, o_ref, *, eps):
    """Fused 1x1-conv + training-BN + ReLU, single VMEM-resident block.

    x: [N, Cin, HW], w: [Cout, Cin] f32 -> o: [N, Cout, HW].
    Uses centered (two-pass in-VMEM) variance, so no cancellation issues.
    """
    n = x_ref.shape[0]
    hw = x_ref.shape[2]
    inv_m = 1.0 / float(n * hw)
    w = w_ref[...].astype(jnp.float32)

    # Per-sample 1x1 conv: y_i [Cout, HW] = w @ x_i.  (K = Cin is tiny; Mosaic
    # pads in-vreg, cost is negligible -- this kernel is HBM-bound.)
    ys = [jnp.dot(w, x_ref[i].astype(jnp.float32),
                  preferred_element_type=jnp.float32) for i in range(n)]

    s = ys[0]
    for y in ys[1:]:
        s = s + y
    mean = jnp.sum(s, axis=1, keepdims=True) * inv_m            # [Cout, 1]

    ds = [y - mean for y in ys]
    ss = ds[0] * ds[0]
    for d in ds[1:]:
        ss = ss + d * d
    var = jnp.sum(ss, axis=1, keepdims=True) * inv_m            # biased (PyTorch)
    inv_std = jax.lax.rsqrt(var + eps)

    for i in range(n):
        o_ref[i] = jnp.maximum(ds[i] * inv_std, 0.0).astype(o_ref.dtype)


def _stats_kernel(x_ref, w_ref, sum_ref, sq_ref, *, hw_total, tile_hw):
    """Pass 1 (large-M path): per-batch partial channel sum / sum-of-squares.

    Stats-only -- no full-precision intermediate is written to HBM.
    Grid: (batch [parallel], hw-tile [arbitrary, accumulated]).
    """
    t = pl.program_id(1)

    @pl.when(t == 0)
    def _():
        sum_ref[...] = jnp.zeros_like(sum_ref)
        sq_ref[...] = jnp.zeros_like(sq_ref)

    x = x_ref[0].astype(jnp.float32)                         # [Cin, tile_hw]
    w = w_ref[...].astype(jnp.float32)                       # [Cout, Cin]
    y = jnp.dot(w, x, preferred_element_type=jnp.float32)    # [Cout, tile_hw]

    # Mask the ragged lane tail of the last spatial tile.
    col = t * tile_hw + jax.lax.broadcasted_iota(jnp.int32, y.shape, 1)
    yv = jnp.where(col < hw_total, y, 0.0)
    sum_ref[...] += jnp.sum(yv, axis=1, keepdims=True)[None]
    sq_ref[...] += jnp.sum(yv * yv, axis=1, keepdims=True)[None]


def _norm_relu_kernel(x_ref, w_ref, sum_ref, sq_ref, o_ref, *, m_total, eps):
    """Pass 2 (large-M path): recompute the cheap 1x1 conv, apply BN + ReLU."""
    x = x_ref[0].astype(jnp.float32)
    w = w_ref[...].astype(jnp.float32)
    y = jnp.dot(w, x, preferred_element_type=jnp.float32)
    inv_m = 1.0 / float(m_total)
    mean = sum_ref[...] * inv_m
    var = jnp.maximum(sq_ref[...] * inv_m - mean * mean, 0.0)   # clamp >= 0
    inv_std = jax.lax.rsqrt(var + eps)
    o_ref[0] = jnp.maximum((y - mean) * inv_std, 0.0).astype(o_ref.dtype)


# ----------------------------------------------------------------------------
# Wrappers
# ----------------------------------------------------------------------------
def _conv1x1_bn_relu(x_nchw, w, out_dtype):
    """x: [N, Cin, H, W], w: [Cout, Cin] f32 -> [N, Cout, H, W] (out_dtype)."""
    n, cin, h, wsp = x_nchw.shape
    cout = w.shape[0]
    hw = h * wsp
    m_total = n * hw
    x3 = x_nchw.reshape(n, cin, hw)          # free (contiguous) reshape

    if m_total <= _FUSED_MAX_ELEMS and n <= _FUSED_MAX_BATCH:
        out = pl.pallas_call(
            functools.partial(_fused_conv_bn_relu_kernel, eps=_EPS),
            out_shape=jax.ShapeDtypeStruct((n, cout, hw), out_dtype),
            grid=(1,),
            in_specs=[
                pl.BlockSpec((n, cin, hw), lambda i: (0, 0, 0)),
                pl.BlockSpec((cout, cin), lambda i: (0, 0)),
            ],
            out_specs=pl.BlockSpec((n, cout, hw), lambda i: (0, 0, 0)),
            compiler_params=pltpu.CompilerParams(
                dimension_semantics=("arbitrary",),
                vmem_limit_bytes=_VMEM_LIMIT,
            ),
        )(x3, w)
    else:
        tile_hw = hw if hw < _TILE_HW else _TILE_HW   # full dim or 128-multiple
        n_t = pl.cdiv(hw, tile_hw)

        part_sum, part_sq = pl.pallas_call(
            functools.partial(_stats_kernel, hw_total=hw, tile_hw=tile_hw),
            out_shape=(
                jax.ShapeDtypeStruct((n, cout, 1), jnp.float32),
                jax.ShapeDtypeStruct((n, cout, 1), jnp.float32),
            ),
            grid=(n, n_t),
            in_specs=[
                pl.BlockSpec((1, cin, tile_hw), lambda b, t: (b, 0, t)),
                pl.BlockSpec((cout, cin), lambda b, t: (0, 0)),
            ],
            out_specs=(
                pl.BlockSpec((1, cout, 1), lambda b, t: (b, 0, 0)),
                pl.BlockSpec((1, cout, 1), lambda b, t: (b, 0, 0)),
            ),
            compiler_params=pltpu.CompilerParams(
                dimension_semantics=("parallel", "arbitrary"),
                vmem_limit_bytes=_VMEM_LIMIT,
            ),
        )(x3, w)

        # Tiny cross-batch combine of the per-core partial statistics.
        ch_sum = jnp.sum(part_sum, axis=0)    # [Cout, 1]
        ch_sq = jnp.sum(part_sq, axis=0)      # [Cout, 1]

        out = pl.pallas_call(
            functools.partial(_norm_relu_kernel, m_total=m_total, eps=_EPS),
            out_shape=jax.ShapeDtypeStruct((n, cout, hw), out_dtype),
            grid=(n, n_t),
            in_specs=[
                pl.BlockSpec((1, cin, tile_hw), lambda b, t: (b, 0, t)),
                pl.BlockSpec((cout, cin), lambda b, t: (0, 0)),
                pl.BlockSpec((cout, 1), lambda b, t: (0, 0)),
                pl.BlockSpec((cout, 1), lambda b, t: (0, 0)),
            ],
            out_specs=pl.BlockSpec((1, cout, tile_hw), lambda b, t: (b, 0, t)),
            compiler_params=pltpu.CompilerParams(
                dimension_semantics=("parallel", "parallel"),
                vmem_limit_bytes=_VMEM_LIMIT,
            ),
        )(x3, w, ch_sum, ch_sq)

    return out.reshape(n, cout, h, wsp)


def _maxpool2_nchw(x):
    """2x2 max-pool, stride 2, floor mode (matches nn.MaxPool2d(2))."""
    # TODO(synk): fuse the 2x2 max-pool into the Pallas normalize pass (needs
    # in-kernel sublane/lane strided pooling); kept as tiny XLA glue for now.
    n, c, h, w = x.shape
    h2, w2 = h // 2, w // 2
    x = x[:, :, :h2 * 2, :w2 * 2]
    return x.reshape(n, c, h2, 2, w2, 2).max(axis=(3, 5))


# ----------------------------------------------------------------------------
# Parameters
# ----------------------------------------------------------------------------
def make_down_params(key, in_channels, down_factor):
    assert down_factor in (2, 4)
    k1, k2, k3, k4 = jax.random.split(key, 4)
    c1_in, c1_out = in_channels, 2 * in_channels
    w1 = jax.random.normal(k1, (c1_out, c1_in), jnp.float32) / jnp.sqrt(float(c1_in))
    b1 = 0.1 * jax.random.normal(k2, (c1_out,), jnp.float32)
    params = {"w1": w1, "b1": b1}      # bias only used by the f32 reference
    if down_factor == 4:
        c2_in, c2_out = c1_out, 4 * in_channels
        w2 = jax.random.normal(k3, (c2_out, c2_in), jnp.float32) / jnp.sqrt(float(c2_in))
        b2 = 0.1 * jax.random.normal(k4, (c2_out,), jnp.float32)
        params.update({"w2": w2, "b2": b2})
    return params


# ----------------------------------------------------------------------------
# Down forward (Pallas) and pure-JAX f32 reference
# ----------------------------------------------------------------------------
@functools.partial(jax.jit, static_argnames=("down_factor",))
def down_forward(params, x_nchw, down_factor):
    x = x_nchw.astype(jnp.float32)
    # Inter-stage tensor in bf16 (halves its HBM traffic); final output f32.
    inter_dtype = jnp.bfloat16 if down_factor == 4 else jnp.float32
    x = _conv1x1_bn_relu(x, params["w1"], out_dtype=inter_dtype)
    x = _maxpool2_nchw(x)
    if down_factor == 4:
        x = _conv1x1_bn_relu(x, params["w2"], out_dtype=jnp.float32)
        x = _maxpool2_nchw(x)
    return x


def down_reference(params, x_nchw, down_factor):
    """Pure-JAX f32 reference (PyTorch training-mode semantics, incl. bias)."""
    def conv_bn_relu(x, w, b):
        y = jnp.einsum("nchw,oc->nohw", x, w) + b[None, :, None, None]
        mean = jnp.mean(y, axis=(0, 2, 3), keepdims=True)
        var = jnp.mean(jnp.square(y - mean), axis=(0, 2, 3), keepdims=True)
        return jnp.maximum((y - mean) * jax.lax.rsqrt(var + _EPS), 0.0)

    def pool(x):
        n, c, h, w = x.shape
        h2, w2 = h // 2, w // 2
        return x[:, :, :h2 * 2, :w2 * 2].reshape(n, c, h2, 2, w2, 2).max(axis=(3, 5))

    x = pool(conv_bn_relu(x_nchw.astype(jnp.float32), params["w1"], params["b1"]))
    if down_factor == 4:
        x = pool(conv_bn_relu(x, params["w2"], params["b2"]))
    return x


# ----------------------------------------------------------------------------
if __name__ == "__main__":
    key = jax.random.PRNGKey(0)
    pkey, xk1, xk2, xk3 = jax.random.split(key, 4)

    in_channels = 4
    params = make_down_params(pkey, in_channels, down_factor=4)

    # 1) Small input, fused single-kernel path, down_factor=2.
    x_small = jax.random.normal(xk1, (2, in_channels, 16, 16), jnp.float32)
    out2 = jax.block_until_ready(down_forward(params, x_small, down_factor=2))
    assert out2.shape == (2, 2 * in_channels, 8, 8), out2.shape
    assert bool(jnp.all(jnp.isfinite(out2)))
    ref2 = down_reference(params, x_small, 2)
    assert float(jnp.max(jnp.abs(out2 - ref2))) < 1e-1

    # 2) Same input, down_factor=4 (two fused stages, bf16 inter-stage).
    out4 = jax.block_until_ready(down_forward(params, x_small, down_factor=4))
    assert out4.shape == (2, 4 * in_channels, 4, 4), out4.shape
    assert bool(jnp.all(jnp.isfinite(out4)))
    ref4 = down_reference(params, x_small, 4)
    assert float(jnp.max(jnp.abs(out4 - ref4))) < 1e-1

    # 3) Odd spatial dims: exercises floor-mode pooling (30 -> 15 -> 7).
    x_odd = jax.random.normal(xk2, (2, in_channels, 30, 30), jnp.float32)
    outo = jax.block_until_ready(down_forward(params, x_odd, down_factor=4))
    assert outo.shape == (2, 4 * in_channels, 7, 7), outo.shape
    assert bool(jnp.all(jnp.isfinite(outo)))
    refo = down_reference(params, x_odd, 4)
    assert float(jnp.max(jnp.abs(outo - refo))) < 1e-1

    # 4) Large spatial input: stage 1 (N*HW = 73728 > 64K) takes the two-pass
    #    tiled path with a ragged last lane-tile; stage 2 is fused.
    x_big = jax.random.normal(xk3, (2, in_channels, 192, 192), jnp.float32)
    outb = jax.block_until_ready(down_forward(params, x_big, down_factor=4))
    assert outb.shape == (2, 4 * in_channels, 48, 48), outb.shape
    assert bool(jnp.all(jnp.isfinite(outb)))
    refb = down_reference(params, x_big, 4)
    assert float(jnp.max(jnp.abs(outb - refb))) < 1e-1

    print("KERNEL_OK")
</pallas_src>

<mosaic_0001>
module attributes {stable_mosaic.version = 11 : i64} {
  func.func @_fused_conv_bn_relu_kernel(%arg0: i32, %arg1: memref<2x4x256xf32, #tpu.memory_space<vmem>>, %arg2: memref<8x4xf32, #tpu.memory_space<vmem>>, %arg3: memref<2x8x256xf32, #tpu.memory_space<vmem>>) attributes {dimension_semantics = [#tpu.dimension_semantics<arbitrary>], iteration_bounds = array<i64: 1>, scalar_prefetch = 0 : i64, scratch_operands = 0 : i64, tpu.core_type = #tpu.core_type<tc>, window_params = [{pipeline_mode = #tpu.pipeline_mode<synchronous>, transform_indices = @transform_0, window_bounds = array<i64: 2, 4, 256>}, {pipeline_mode = #tpu.pipeline_mode<synchronous>, transform_indices = @transform_1, window_bounds = array<i64: 8, 4>}, {pipeline_mode = #tpu.pipeline_mode<synchronous>, transform_indices = @transform_2, window_bounds = array<i64: 2, 8, 256>}]} {
    %c0 = arith.constant 0 : index
    %c0_0 = arith.constant 0 : index
    %0 = vector.load %arg2[%c0, %c0_0] : memref<8x4xf32, #tpu.memory_space<vmem>>, vector<8x4xf32>
    %c0_1 = arith.constant 0 : index
    %c0_2 = arith.constant 0 : index
    %c0_3 = arith.constant 0 : index
    %1 = vector.load %arg1[%c0_1, %c0_2, %c0_3] : memref<2x4x256xf32, #tpu.memory_space<vmem>>, vector<1x4x256xf32>
    %2 = vector.shape_cast %1 : vector<1x4x256xf32> to vector<4x256xf32>
    %cst = arith.constant dense<0.000000e+00> : vector<8x256xf32>
    %3 = tpu.matmul %0, %2, %cst {dimension_numbers = #tpu.dot_dimension_numbers<[1], [0], [0], [1], [0, 0, 1, 1], [], []>} : vector<8x4xf32>, vector<4x256xf32>, vector<8x256xf32> -> vector<8x256xf32>
    %c1 = arith.constant 1 : index
    %c0_4 = arith.constant 0 : index
    %c0_5 = arith.constant 0 : index
    %4 = vector.load %arg1[%c1, %c0_4, %c0_5] : memref<2x4x256xf32, #tpu.memory_space<vmem>>, vector<1x4x256xf32>
    %5 = vector.shape_cast %4 : vector<1x4x256xf32> to vector<4x256xf32>
    %cst_6 = arith.constant dense<0.000000e+00> : vector<8x256xf32>
    %6 = tpu.matmul %0, %5, %cst_6 {dimension_numbers = #tpu.dot_dimension_numbers<[1], [0], [0], [1], [0, 0, 1, 1], [], []>} : vector<8x4xf32>, vector<4x256xf32>, vector<8x256xf32> -> vector<8x256xf32>
    %7 = arith.addf %3, %6 : vector<8x256xf32>
    %cst_7 = arith.constant dense<0.000000e+00> : vector<8xf32>
    %8 = vector.multi_reduction <add>, %7, %cst_7 [1] : vector<8x256xf32> to vector<8xf32>
    %9 = vector.shape_cast %8 : vector<8xf32> to vector<8x1xf32>
    %cst_8 = arith.constant 0.001953125 : f32
    %10 = vector.broadcast %cst_8 : f32 to vector<8x1xf32>
    %11 = arith.mulf %9, %10 : vector<8x1xf32>
    %12 = vector.broadcast %11 : vector<8x1xf32> to vector<8x256xf32>
    %13 = arith.subf %3, %12 : vector<8x256xf32>
    %14 = vector.broadcast %11 : vector<8x1xf32> to vector<8x256xf32>
    %15 = arith.subf %6, %14 : vector<8x256xf32>
    %16 = arith.mulf %13, %13 : vector<8x256xf32>
    %17 = arith.mulf %15, %15 : vector<8x256xf32>
    %18 = arith.addf %16, %17 : vector<8x256xf32>
    %cst_9 = arith.constant dense<0.000000e+00> : vector<8xf32>
    %19 = vector.multi_reduction <add>, %18, %cst_9 [1] : vector<8x256xf32> to vector<8xf32>
    %20 = vector.shape_cast %19 : vector<8xf32> to vector<8x1xf32>
    %cst_10 = arith.constant 0.001953125 : f32
    %21 = vector.broadcast %cst_10 : f32 to vector<8x1xf32>
    %22 = arith.mulf %20, %21 : vector<8x1xf32>
    %cst_11 = arith.constant 9.99999974E-6 : f32
    %23 = vector.broadcast %cst_11 : f32 to vector<8x1xf32>
    %24 = arith.addf %22, %23 : vector<8x1xf32>
    %25 = math.rsqrt %24 : vector<8x1xf32>
    %26 = vector.broadcast %25 : vector<8x1xf32> to vector<8x256xf32>
    %27 = arith.mulf %13, %26 : vector<8x256xf32>
    %cst_12 = arith.constant 0.000000e+00 : f32
    %28 = vector.broadcast %cst_12 : f32 to vector<8x256xf32>
    %29 = arith.maximumf %27, %28 : vector<8x256xf32>
    %c0_13 = arith.constant 0 : index
    %c0_14 = arith.constant 0 : index
    %c0_15 = arith.constant 0 : index
    %30 = vector.load %arg3[%c0_13, %c0_14, %c0_15] : memref<2x8x256xf32, #tpu.memory_space<vmem>>, vector<1x8x256xf32>
    %31 = vector.shape_cast %30 : vector<1x8x256xf32> to vector<8x256xf32>
    %32 = vector.shape_cast %29 : vector<8x256xf32> to vector<1x8x256xf32>
    tpu.vector_store %arg3[%c0_13, %c0_14, %c0_15], %32 {strides = array<i32>} : memref<2x8x256xf32, #tpu.memory_space<vmem>>, vector<1x8x256xf32>,
    %33 = vector.broadcast %25 : vector<8x1xf32> to vector<8x256xf32>
    %34 = arith.mulf %15, %33 : vector<8x256xf32>
    %cst_16 = arith.constant 0.000000e+00 : f32
    %35 = vector.broadcast %cst_16 : f32 to vector<8x256xf32>
    %36 = arith.maximumf %34, %35 : vector<8x256xf32>
    %c1_17 = arith.constant 1 : index
    %c0_18 = arith.constant 0 : index
    %c0_19 = arith.constant 0 : index
    %37 = vector.load %arg3[%c1_17, %c0_18, %c0_19] : memref<2x8x256xf32, #tpu.memory_space<vmem>>, vector<1x8x256xf32>
    %38 = vector.shape_cast %37 : vector<1x8x256xf32> to vector<8x256xf32>
    %39 = vector.shape_cast %36 : vector<8x256xf32> to vector<1x8x256xf32>
    tpu.vector_store %arg3[%c1_17, %c0_18, %c0_19], %39 {strides = array<i32>} : memref<2x8x256xf32, #tpu.memory_space<vmem>>, vector<1x8x256xf32>,
    return
  }
  func.func @transform_0(%arg0: i32) -> (i32, i32, i32) {
    %c0_i32 = arith.constant 0 : i32
    %c0_i32_0 = arith.constant 0 : i32
    %c0_i32_1 = arith.constant 0 : i32
    %c0_i32_2 = arith.constant 0 : i32
    return %c0_i32, %c0_i32_0, %c0_i32_1 : i32, i32, i32
  }
  func.func @transform_1(%arg0: i32) -> (i32, i32) {
    %c0_i32 = arith.constant 0 : i32
    %c0_i32_0 = arith.constant 0 : i32
    %c0_i32_1 = arith.constant 0 : i32
    return %c0_i32, %c0_i32_0 : i32, i32
  }
  func.func @transform_2(%arg0: i32) -> (i32, i32, i32) {
    %c0_i32 = arith.constant 0 : i32
    %c0_i32_0 = arith.constant 0 : i32
    %c0_i32_1 = arith.constant 0 : i32
    %c0_i32_2 = arith.constant 0 : i32
    return %c0_i32, %c0_i32_0, %c0_i32_1 : i32, i32, i32
  }
}

</mosaic_0001>

<bundles_post_ra>
// kernel: down_forward.1
= control target key start
LH: loop header
LB: loop body
LE: loop exit
PB: predicated region body
PF: predicated region fallthrough
CT: control target
= control target key end

     0   :  { %vm19_vm0 = vcmask 1043456   ;;  %v227_v2 = vmov 0.0   ;;  %vm15_vm1 = vcmask 31744   ;;  %s264_s0 = inlined_call_operand.vmem [shape: f32[2,4,256], index: 0, kind: input, shape index: {}]   ;;  %s265_s1 = inlined_call_operand.vmem [shape: f32[8,4], index: 1, kind: input, shape index: {}]   ;;  %s266_s2 = inlined_call_operand.vmem [shape: f32[2,8,256], index: 2, kind: output, shape index: {}]  }
   0x1   :  { %v12_v0 = vld [vmem:[%s264_s0] sm:$0xff]  ;;  %v216_v1 = vld [vmem:[%s264_s0 + $0x8] sm:$0xff]  ;;  %88 = vmatprep.mubr.f32.mxu0 %v227_v2  ;;  %167 = vmatprep.mubr.f32.mxu1 %v227_v2 }
   0x2   :  { %v14_v3 = vcombine.high %v12_v0, %v12_v0  ;;  %v98_v4 = vcombine.high %v216_v1, %v216_v1  ;;  %v11_v5 = vld [vmem:[%s265_s1] sm:$0xff] }
   0x4   :  { %213 = vmatprep.subr.msk.mxu0 %vm19_vm0, %v14_v3  ;;  %217 = vmatprep.subr.msk.mxu1 %vm19_vm0, %v98_v4 }
   0x5   :  { %214 = vmatpush1.msk.msra.mxu0 %vm19_vm0, %v12_v0  ;;  %218 = vmatpush1.msk.msra.mxu1 %vm19_vm0, %v216_v1 }
   0x6   :  { %215 = vmatmul.mubr.msk.f32.vlgmr.msra.gmra.mrb[0].mxu0 %vm15_vm1, %v11_v5  ;;  %219 = vmatmul.mubr.msk.f32.vlgmr.msra.gmra.mrb[0].mxu1 %vm15_vm1, %v11_v5 }
  0xd9   :  { %v90_v6 = vpop.f32.mrb[0].mxu0  ;;  %v169_v7 = vpop.f32.mrb[0].mxu1 }
  0xda   :  { %v174_v8 = vadd.f32 %v169_v7, %v90_v6  ;;  %v92_v9 = vpop.f32.mrb[1].mxu0  ;;  %v171_v10 = vpop.f32.mrb[1].mxu1 }
  0xdb   :  { %v175_v11 = vadd.f32 %v171_v10, %v92_v9 }
  0xdd   :  { %v176_v12 = vadd.f32 %v175_v11, %v174_v8 }
  0xdf   :  { %177 = vadd.xlane.f32.xlu0 %v176_v12 }
 0x16c   :  { %v178_v13 = vpop.xlane.xlu0 %177 }
 0x16d   :  { %v179_v14 = vmul.f32 0.001953125, %v178_v13 }
 0x16f   :  { %v180_v15 = vsub.f32 %v90_v6, %v179_v14  ;;  %v181_v16 = vsub.f32 %v92_v9, %v179_v14  ;;  %v182_v17 = vsub.f32 %v169_v7, %v179_v14  ;;  %v183_v18 = vsub.f32 %v171_v10, %v179_v14 }
 0x171   :  { %v184_v19 = vmul.f32 %v180_v15, %v180_v15  ;;  %v185_v20 = vmul.f32 %v181_v16, %v181_v16  ;;  %v186_v21 = vmul.f32 %v182_v17, %v182_v17  ;;  %v187_v22 = vmul.f32 %v183_v18, %v183_v18 }
 0x173   :  { %v188_v23 = vadd.f32 %v186_v21, %v184_v19  ;;  %v189_v24 = vadd.f32 %v187_v22, %v185_v20 }
 0x175   :  { %v190_v25 = vadd.f32 %v189_v24, %v188_v23 }
 0x177   :  { %191 = vadd.xlane.f32.xlu0 %v190_v25 }
 0x204   :  { %v192_v26 = vpop.xlane.xlu0 %191 }
 0x205   :  { %v193_v27 = vmul.f32 0.001953125, %v192_v26 }
 0x207   :  { %v194_v28 = vadd.f32 1e-05, %v193_v27 }
 0x209   :  { %225 = vrsqrt.f32 %v194_v28 }
 0x213   :  { %v226_v29 = vpop.eup %225 }
 0x214   :  { %v196_v30 = vmul.f32 %v226_v29, %v180_v15  ;;  %v197_v31 = vmul.f32 %v226_v29, %v181_v16  ;;  %v202_v32 = vmul.f32 %v226_v29, %v182_v17  ;;  %v203_v33 = vmul.f32 %v226_v29, %v183_v18 }
 0x216   :  { %v198_v34 = vmax.f32 %v196_v30, 0.0  ;;  %v199_v35 = vmax.f32 %v197_v31, 0.0  ;;  %v204_v36 = vmax.f32 %v202_v32, 0.0  ;;  %v205_v37 = vmax.f32 %v203_v33, 0.0 }
 0x218   :  { %200 = vst [vmem:[%s266_s2] sm:$0xff] %v198_v34  ;;  %201 = vst [vmem:[%s266_s2 + $0x8] sm:$0xff] %v199_v35 }
 0x219   :  { %220 = vst [vmem:[%s266_s2 + $0x10] sm:$0xff] %v204_v36  ;;  %221 = vst [vmem:[%s266_s2 + $0x18] sm:$0xff] %v205_v37 }

</bundles_post_ra>
